<compile_context>
chip_gen: v7x
topology: tpu7x:2x2x1
jax: 0.10.0
libtpu: 0.0.40
codegen_flags: <defaults>
</compile_context>

<pallas_src>
import jax
import jax.numpy as jnp
from jax.experimental import pallas as pl
from jax.experimental.pallas import tpu as pltpu


def _glm_kernel(alpha_ref, xt_ref, at_ref, pt_ref, conc_t_ref):
    """One lane-dense (K, tm) tile of the GLM forward.

    alpha_ref:  (1,) f32 in SMEM  -- exp(log_alpha), precomputed in the wrapper
    xt_ref:     (C, tm) f32 tile of X^T (samples on the lane axis)
    at_ref:     (K, C) f32 full A_full^T
    pt_ref:     (K, tm) f32 output tile of P^T
    conc_t_ref: (K, tm) f32 output tile of concentration^T
    """
    # logits^T = A_full^T @ X^T  -> (K, tm): MXU matmul, result already lane-dense.
    logits_t = jnp.dot(at_ref[...], xt_ref[...],
                       preferred_element_type=jnp.float32)
    # Numerically stable softmax over the class axis (axis 0 == sublanes -> XLU).
    m = jnp.max(logits_t, axis=0, keepdims=True)          # (1, tm)
    e = jnp.exp(logits_t - m)                              # EUP, K*tm/1024 vregs
    denom = jnp.sum(e, axis=0, keepdims=True)              # (1, tm)
    # Approximate reciprocal on the EUP + one Newton step -> ~f32 accuracy.
    inv = pl.reciprocal(denom, approx=True)
    inv = inv * (2.0 - denom * inv)
    p = e * inv
    pt_ref[...] = p
    conc_t_ref[...] = alpha_ref[0] * p


def _round_up(x, m):
    return ((x + m - 1) // m) * m


def dirichlet_multinomial_glm_forward(X, A, log_alpha, *, tm=1024,
                                      transpose_outputs=True):
    """Mirrors DirichletMultinomialGLM.forward.

    X:         (N, n_covariates) float32
    A:         (n_covariates, n_classes - 1) float32
    log_alpha: (1,) float32
    tm:        samples per grid step (rounded to a multiple of 128;
               1024-8192 recommended for large N, lean larger on v7x)
    Returns (A_full, alpha, concentration, P).  concentration / P are (N, n_classes)
    unless transpose_outputs=False, in which case they are (n_classes, N).
    """
    N, C = X.shape
    K = A.shape[1] + 1

    # Parameter glue (get_full_A / exp(log_alpha) in the module).
    A_full = jnp.concatenate([A, jnp.zeros((C, 1), dtype=A.dtype)], axis=1)
    alpha = jnp.exp(log_alpha)

    # Lane-dense sample tile: multiple of 128, no bigger than needed.
    tm = max(128, min(_round_up(tm, 128), _round_up(N, 128)))
    n_blocks = pl.cdiv(N, tm)
    n_pad = n_blocks * tm

    # Pad the sample axis so every grid step sees a full tile; padded rows are
    # all-zero -> finite uniform softmax, sliced off below.
    Xp = jnp.pad(X, ((0, n_pad - N), (0, 0))) if n_pad != N else X
    X_T = Xp.T                 # (C, n_pad): samples on the 128-lane axis
    A_T = A_full.T             # (K, C)

    P_T, conc_T = pl.pallas_call(
        _glm_kernel,
        out_shape=(
            jax.ShapeDtypeStruct((K, n_pad), jnp.float32),
            jax.ShapeDtypeStruct((K, n_pad), jnp.float32),
        ),
        grid_spec=pltpu.PrefetchScalarGridSpec(
            num_scalar_prefetch=0,
            grid=(n_blocks,),
            in_specs=[
                # alpha: one f32 scalar in SMEM, same for every grid step.
                pl.BlockSpec(memory_space=pltpu.MemorySpace.SMEM),
                # X^T: one lane-dense (C, tm) column tile per grid step.
                pl.BlockSpec((C, tm), lambda i: (0, i)),
                # A_full^T: full (K, C) matrix, reused every step.
                pl.BlockSpec((K, C), lambda i: (0, 0)),
            ],
            out_specs=[
                pl.BlockSpec((K, tm), lambda i: (0, i)),
                pl.BlockSpec((K, tm), lambda i: (0, i)),
            ],
        ),
        compiler_params=pltpu.CompilerParams(
            dimension_semantics=("parallel",),
        ),
    )(alpha, X_T, A_T)

    if transpose_outputs:
        # Restore the module's (N, K) layout (one XLA transpose pass; set
        # transpose_outputs=False to skip it if the consumer accepts (K, N)).
        P = jnp.transpose(P_T)[:N]
        concentration = jnp.transpose(conc_T)[:N]
    else:
        P = P_T[:, :N]
        concentration = conc_T[:, :N]

    return A_full, alpha, concentration, P


def _reference_forward(X, A, log_alpha):
    A_full = jnp.concatenate([A, jnp.zeros((A.shape[0], 1), dtype=A.dtype)], axis=1)
    alpha = jnp.exp(log_alpha)
    P = jax.nn.softmax(X @ A_full, axis=1)
    concentration = alpha * P
    return A_full, alpha, concentration, P


if __name__ == "__main__":
    # N deliberately not a multiple of the tile so the cdiv + padding path runs;
    # grid has 3 steps with tm=1024 (exercises pipelining / megacore sharding).
    N, n_covariates, n_classes = 2500, 16, 8

    key = jax.random.PRNGKey(0)
    kx, ka = jax.random.split(key)
    X = jax.random.normal(kx, (N, n_covariates), dtype=jnp.float32)
    # Module default init would be zeros / log_alpha = 1.0; use random A so the
    # softmax is non-trivial.
    A = 0.1 * jax.random.normal(ka, (n_covariates, n_classes - 1), dtype=jnp.float32)
    log_alpha = jnp.ones((1,), dtype=jnp.float32)

    A_full, alpha, concentration, P = dirichlet_multinomial_glm_forward(
        X, A, log_alpha, tm=1024)
    jax.block_until_ready((A_full, alpha, concentration, P))

    # Correctness check against a pure-JAX reference.
    A_ref, alpha_ref, conc_ref, P_ref = _reference_forward(X, A, log_alpha)
    assert P.shape == (N, n_classes) and concentration.shape == (N, n_classes)
    assert jnp.allclose(A_full, A_ref)
    assert jnp.allclose(alpha, alpha_ref)
    assert jnp.allclose(P, P_ref, atol=1e-5, rtol=1e-5)
    assert jnp.allclose(concentration, conc_ref, atol=1e-5, rtol=1e-5)

    print("KERNEL_OK")
</pallas_src>

<mosaic_0001>
module attributes {stable_mosaic.version = 11 : i64} {
  func.func @_glm_kernel(%arg0: i32, %arg1: memref<1xf32, #tpu.memory_space<smem>>, %arg2: memref<16x1024xf32, #tpu.memory_space<vmem>>, %arg3: memref<8x16xf32, #tpu.memory_space<vmem>>, %arg4: memref<8x1024xf32, #tpu.memory_space<vmem>>, %arg5: memref<8x1024xf32, #tpu.memory_space<vmem>>) attributes {dimension_semantics = [#tpu.dimension_semantics<parallel>], iteration_bounds = array<i64: 3>, scalar_prefetch = 0 : i64, scratch_operands = 0 : i64, tpu.core_type = #tpu.core_type<tc>, window_params = [{transform_indices = @transform_0, window_bounds = array<i64: 1>}, {transform_indices = @transform_1, window_bounds = array<i64: 16, 1024>}, {pipeline_mode = #tpu.pipeline_mode<synchronous>, transform_indices = @transform_2, window_bounds = array<i64: 8, 16>}, {transform_indices = @transform_3, window_bounds = array<i64: 8, 1024>}, {transform_indices = @transform_4, window_bounds = array<i64: 8, 1024>}]} {
    %c0 = arith.constant 0 : index
    %c0_0 = arith.constant 0 : index
    %0 = vector.load %arg3[%c0, %c0_0] : memref<8x16xf32, #tpu.memory_space<vmem>>, vector<8x16xf32>
    %c0_1 = arith.constant 0 : index
    %c0_2 = arith.constant 0 : index
    %1 = vector.load %arg2[%c0_1, %c0_2] : memref<16x1024xf32, #tpu.memory_space<vmem>>, vector<16x1024xf32>
    %cst = arith.constant dense<0.000000e+00> : vector<8x1024xf32>
    %2 = tpu.matmul %0, %1, %cst {dimension_numbers = #tpu.dot_dimension_numbers<[1], [0], [0], [1], [0, 0, 1, 1], [], []>} : vector<8x16xf32>, vector<16x1024xf32>, vector<8x1024xf32> -> vector<8x1024xf32>
    %cst_3 = arith.constant dense<0xFF800000> : vector<1024xf32>
    %3 = vector.multi_reduction <maximumf>, %2, %cst_3 [0] : vector<8x1024xf32> to vector<1024xf32>
    %4 = vector.shape_cast %3 : vector<1024xf32> to vector<1x1024xf32>
    %5 = vector.broadcast %4 : vector<1x1024xf32> to vector<8x1024xf32>
    %6 = arith.subf %2, %5 : vector<8x1024xf32>
    %7 = math.exp %6 : vector<8x1024xf32>
    %cst_4 = arith.constant dense<0.000000e+00> : vector<1024xf32>
    %8 = vector.multi_reduction <add>, %7, %cst_4 [0] : vector<8x1024xf32> to vector<1024xf32>
    %9 = vector.shape_cast %8 : vector<1024xf32> to vector<1x1024xf32>
    %10 = tpu.reciprocal %9 {approx = true} : vector<1x1024xf32> -> vector<1x1024xf32>
    %11 = arith.mulf %9, %10 : vector<1x1024xf32>
    %cst_5 = arith.constant 2.000000e+00 : f32
    %12 = vector.broadcast %cst_5 : f32 to vector<1x1024xf32>
    %13 = arith.subf %12, %11 : vector<1x1024xf32>
    %14 = arith.mulf %10, %13 : vector<1x1024xf32>
    %15 = vector.broadcast %14 : vector<1x1024xf32> to vector<8x1024xf32>
    %16 = arith.mulf %7, %15 : vector<8x1024xf32>
    %c0_6 = arith.constant 0 : index
    %c0_7 = arith.constant 0 : index
    %17 = vector.load %arg4[%c0_6, %c0_7] : memref<8x1024xf32, #tpu.memory_space<vmem>>, vector<8x1024xf32>
    tpu.vector_store %arg4[%c0_6, %c0_7], %16 {strides = array<i32>} : memref<8x1024xf32, #tpu.memory_space<vmem>>, vector<8x1024xf32>,
    %c0_8 = arith.constant 0 : index
    %18 = memref.load %arg1[%c0_8] : memref<1xf32, #tpu.memory_space<smem>>
    %19 = vector.broadcast %18 : f32 to vector<8x1024xf32>
    %20 = arith.mulf %19, %16 : vector<8x1024xf32>
    %c0_9 = arith.constant 0 : index
    %c0_10 = arith.constant 0 : index
    %21 = vector.load %arg5[%c0_9, %c0_10] : memref<8x1024xf32, #tpu.memory_space<vmem>>, vector<8x1024xf32>
    tpu.vector_store %arg5[%c0_9, %c0_10], %20 {strides = array<i32>} : memref<8x1024xf32, #tpu.memory_space<vmem>>, vector<8x1024xf32>,
    return
  }
  func.func @transform_0(%arg0: i32) -> i32 {
    %c0_i32 = arith.constant 0 : i32
    %c0_i32_0 = arith.constant 0 : i32
    return %c0_i32 : i32
  }
  func.func @transform_1(%arg0: i32) -> (i32, i32) {
    %c0_i32 = arith.constant 0 : i32
    %c0_i32_0 = arith.constant 0 : i32
    return %c0_i32, %arg0 : i32, i32
  }
  func.func @transform_2(%arg0: i32) -> (i32, i32) {
    %c0_i32 = arith.constant 0 : i32
    %c0_i32_0 = arith.constant 0 : i32
    %c0_i32_1 = arith.constant 0 : i32
    return %c0_i32, %c0_i32_0 : i32, i32
  }
  func.func @transform_3(%arg0: i32) -> (i32, i32) {
    %c0_i32 = arith.constant 0 : i32
    %c0_i32_0 = arith.constant 0 : i32
    return %c0_i32, %arg0 : i32, i32
  }
  func.func @transform_4(%arg0: i32) -> (i32, i32) {
    %c0_i32 = arith.constant 0 : i32
    %c0_i32_0 = arith.constant 0 : i32
    return %c0_i32, %arg0 : i32, i32
  }
}

</mosaic_0001>

<bundles_post_ra>
// kernel: tpu_custom_call.1
= control target key start
LH: loop header
LB: loop body
LE: loop exit
PB: predicated region body
PF: predicated region fallthrough
CT: control target
= control target key end

     0   :  { %s1532_s0 = inlined_call_operand.<no memory space> [shape: f32[1], index: 0, kind: input, shape index: {}]   ;;  %s1533_s1 = inlined_call_operand.hbm [shape: f32[16,3072], index: 1, kind: input, shape index: {}]   ;;  %s1534_s2 = inlined_call_operand.hbm [shape: f32[8,16], index: 2, kind: input, shape index: {}]   ;;  %s1535_s3 = inlined_call_operand.hbm [shape: f32[8,3072], index: 3, kind: output, shape index: {0}]   ;;  %s1536_s4 = inlined_call_operand.hbm [shape: f32[8,3072], index: 4, kind: output, shape index: {1}]  }
   0x1   :  { %10 = sst [smem:[#allocation2]] %s1532_s0 }
   0x2   :  { %11 = vsyncpa [#allocation4], 0 }
   0x3   :  { %13 = vsyncpa [#allocation4 + $0x1], 0 }
   0x4   :  { %14 = vsyncpa [#allocation7], 0 }
   0x5   :  { %15 = vsyncpa [#allocation5], 0 }
   0x6   :  { %17 = vsyncpa [#allocation5 + $0x1], 0 }
   0x7   :  { %18 = vsyncpa [#allocation10], 0 }
   0x8   :  { %20 = vsyncpa [#allocation10 + $0x1], 0  ;;  %s1220_s17 = smov 0   ;;  %s1222_s18 = smov 0  }
   0x9   :  { %s1224_s19 = smov 0   ;;  %s1226_s20 = smov 0  }
   0xa LB: > { %s1241_s0 = sadd.s32 4294967295, %s1182_s20   ;;  %s881_s21 = sadd.s32 4294967294, %s1182_s20   ;;  %s1182_s20 = sphi %s1226_s20, %s1559_s20   ;;  %s1178_s19 = sphi %s1224_s19, %s1558_s19   ;;  %s1174_s18 = sphi %s1222_s18, %s1557_s18   ;;  %s1170_s17 = sphi %s1220_s17, %s1556_s17  }
   0xb   : > { %s1245_s22 = sadd.s32 1, %s1182_s20   ;;  %s54_s23 = sadd.s32 1, %s1178_s19 }
   0xc   : > { %s51_s24 = ssub.s32 %s1182_s20, %s1245_s22  ;;  %p61_p0 = scmp.ne.s32.totalorder %s1178_s19, %s1174_s18 }
   0xd   : > { %p52_p1 = scmp.eq.s32.totalorder %s51_s24, 0  ;;  %p62_p2 = scmp.eq.s32.totalorder %s1182_s20, 0 }
   0xe   : > { %p67_p3 = scmp.ne.s32.totalorder %s1174_s18, %s1170_s17  ;;  %p1537_p4 = scmp.eq.s32.totalorder %s1241_s0, 0 }
   0xf   : > { %s1257_s25 = scalar_select %p52_p1, %s1178_s19, %s54_s23  }
  0x10   : > { %p1259_p5 = por %p62_p2, %p61_p0  ;;  %p1265_p6 = por %p1537_p4, %p67_p3 }
  0x11   : > { %p112_p7 = scmp.eq.s32.totalorder %s1241_s0, 2  ;;  %p118_p8 = scmp.eq.s32.totalorder %s881_s21, 2 }
  0x12   : > { %s1543_s27 = scalar_select %p1265_p6, 1, 0 }
  0x13   : > { %p882_p9 = scmp.ge.s32.totalorder %s1182_s20, 1  ;;  %p151_p10 = scmp.lt.s32.totalorder %s1182_s20, 4 }
  0x14   : > { %p1272_p11 = por %p112_p7, %p61_p0  ;;  %p1276_p12 = por %p118_p8, %p67_p3 }
  0x15   : > { %p1280_p13 = pnand %p882_p9, %p151_p10  ;;  %s1184_s5 = smov [#allocation6]  }
  0x16   : > { %s1544_s28 = scalar_select %p1272_p11, 1, 0 }
  0x17   : > { %s1545_s29 = scalar_select %p1276_p12, 1, 0 }
  0x18   : > { %s1546_s30 = scalar_select %p1280_p13, 1, 0 }
  0x19   : > { %p934_p1 = pneg %p1280_p13  ;;  %s167_s6 = sshll.u32 %s1184_s5, 4  ;;  %s168_s6 = int_to_ptr.vmem [resolvable:$true] %s167_s6 }
  0x1a   : > { %p950_p2 = scmp.lt.s32.totalorder %s1182_s20, 3  ;;  %s178_s8 = sand.u32 1, %s1178_s19  }
  0x1b   : > { %p1289_p0 = pnand %p934_p1, %p1537_p4  ;;  %s885_s10 = sshll.u32 %s178_s8, 7 }
  0x1c   : > { %p1296_p3 = pnand %p950_p2, %p1259_p5  ;;  %s1022_s13 = scalar_lea.hbm %s1534_s2, 128 }
  0x1d   : > { %p1023_p7 = scmp.ne.s32.totalorder %s1534_s2, %s1022_s13  ;;  %p1024_p8 = pneg %p1289_p0 }
  0x1e   : > { %s1548_s9 = scalar_select %p1296_p3, 1, 0 }
  0x1f   : > { %p1025_p9 = pnand %p1024_p8, %p1023_p7  ;;  %p1029_p5 = scmp.lt.u32.totalorder %s1022_s13, %s1534_s2 }
  0x21   : > { %p1026_p10 = pneg %p1025_p9 }
  0x23   : > { %p1031_p1 = pnand %p1029_p5, %p1026_p10 }
  0x25   : > { %1034 = shalt.err (!%p1031_p1)
}
  0x26   : > { %s1035_s23 = scalar_lea.vmem %s168_s6, 128  ;;  %p1043_p11 = scmp.lt.s32.totalorder %s168_s6, %s168_s6 }
  0x27   : > { %p1036_p2 = scmp.ne.s32.totalorder %s168_s6, %s1035_s23  ;;  %p1044_p6 = scmp.lt.s32.totalorder %s1035_s23, %s1035_s23 }
  0x29   : > { %p1038_p4 = pnand %p1036_p2, %p1024_p8  ;;  %p1045_p13 = por %p1044_p6, %p1043_p11 }
  0x2b   : > { %p1039_p12 = pneg %p1038_p4 }
  0x2d   : > { %p1046_p3 = pnand %p1045_p13, %p1039_p12 }
  0x2f   : > { %1049 = shalt.err (!%p1046_p3)
}
  0x30   : > { %937 = dma.hbm_to_vmem [thread:$0]  (!%p1289_p0), %s1534_s2, 128, %s168_s6, [#allocation7]  }
  0x31   : > { %s905_s5 = sshll.u32 %s1182_s20, 10  ;;  %s182_s11 = scalar_lea.vmem [#allocation3], %s885_s10 }
  0x32   : > { %s189_s12 = sshll.u32 %s182_s11, 4  ;;  %s1320_s15 = scalar_lea.hbm %s1533_s1, %s905_s5  ;;  %s1322_s12 = int_to_ptr.vmem [resolvable:$true] %s189_s12 }
  0x33   : > { %s1324_s7 = scalar_lea.sflag [#allocation4], %s178_s8  ;;  %s1050_s16 = scalar_lea.hbm %s1320_s15, 2048 }
  0x34   : > { %p1051_p4 = scmp.ne.s32.totalorder %s1320_s15, %s1050_s16  ;;  %p1549_p6 = scmp.ne.s32.totalorder %s1548_s9, 0 }
  0x35   : > { %s1055_s21 = scalar_lea.hbm %s1533_s1, 6144  ;;  %p1056_p0 = scmp.lt.u32.totalorder %s1320_s15, %s1533_s1 }
  0x36   : > { %p1052_p11 = pneg %p1549_p6  ;;  %p1057_p3 = scmp.lt.u32.totalorder %s1055_s21, %s1050_s16 }
  0x37   : > { %p1059_p8 = scmp.lt.u32.totalorder %s1050_s16, %s1320_s15 }
  0x38   : > { %p1053_p12 = pnand %p1052_p11, %p1051_p4  ;;  %p1058_p7 = por %p1057_p3, %p1056_p0 }
  0x3a   : > { %p1054_p13 = pneg %p1053_p12  ;;  %p1060_p9 = por %p1059_p8, %p1058_p7 }
  0x3c   : > { %p1061_p10 = pnand %p1060_p9, %p1054_p13 }
  0x3e   : > { %1064 = shalt.err (!%p1061_p10)
}
  0x3f   : > { %s1065_s8 = scalar_lea.vmem %s1322_s12, 2048  ;;  %s1185_s26 = smov [#allocation3]  }
  0x40   : > { %p1066_p5 = scmp.ne.s32.totalorder %s1322_s12, %s1065_s8  ;;  %s1070_s5 = sshll.u32 %s1185_s26, 4  ;;  %s1071_s5 = int_to_ptr.vmem [resolvable:$false] %s1070_s5 }
  0x41   : > { %s1072_s11 = scalar_lea.vmem %s1071_s5, 4096  ;;  %p1073_p4 = scmp.lt.s32.totalorder %s1322_s12, %s1071_s5 }
  0x42   : > { %p1068_p1 = pnand %p1066_p5, %p1052_p11  ;;  %p1074_p12 = scmp.lt.s32.totalorder %s1072_s11, %s1065_s8 }
  0x44   : > { %p1069_p2 = pneg %p1068_p1  ;;  %p1075_p0 = por %p1074_p12, %p1073_p4 }
  0x46   : > { %p1076_p3 = pnand %p1075_p0, %p1069_p2 }
  0x48   : > { %1079 = shalt.err (!%p1076_p3)
}
  0x49   : > { %s1186_s13 = smov 3072   ;;  %s1187_s14 = smov 1024  }
  0x4a   : > { %s1188_s16 = smov 64   ;;  %p1550_p11 = scmp.ne.s32.totalorder %s1546_s30, 0 }
  0x4b   : > { %941 = dma.hbm_to_vmem [thread:$0]  (!%p1549_p6), %s1320_s15, 2048, %s1322_s12, %s1324_s7, %s1186_s13, %s1187_s14, %s1188_s16  }
  0x4c   : > { %201 = sbr.rel (%p1550_p11) target bundleno = 410 (0x19a), region = 32  ;;  %s1355_s6 = sand.u32 (!%p1550_p11), 1, %s1174_s18  }
  0x4d   : > { %s889_s10 = sshll.u32 (!%p1550_p11), %s1355_s6, 7  ;;  %s204_s21 = scalar_lea.sflag (!%p1550_p11), [#allocation4], %s1355_s6 }
  0x4e   : > { %s1359_s23 = scalar_lea.vmem (!%p1550_p11), [#allocation3], %s889_s10  ;;  %p1551_p13 = scmp.ne.s32.totalorder (!%p1550_p11), %s1543_s27, 0 }
  0x53   : > { %1153 = dma.done.wait (%p1551_p13), %s204_s21, 2048  }
  0x54   : > { %1155 = vsyncadd (%p1551_p13), %s204_s21, 4294965248  ;;  %p1552_p6 = scmp.eq.s32.totalorder %s1241_s0, 0 }
  0x56   : > { %1157 = dma.done.wait (%p1552_p6), [#allocation7], 128   ;;  %p1553_p7 = pmov %p1552_p6 }
  0x57   : > { %v1189_v0 = vmov 0.0   ;;  %v246_v1 = vld [vmem:[%s1359_s23 + $0x8] sm:$0xff]  ;;  %v248_v3 = vld [vmem:[%s1359_s23 + $0x18] sm:$0xff]  ;;  %v245_v6 = vld [vmem:[%s1359_s23] sm:$0xff]  ;;  %vm261_vm0 = vcmask 130048   ;;  %s717_s27 = sld [smem:[#allocation2]] }
  0x58   : > { %1159 = vsyncadd (%p1553_p7), [#allocation7], 4294967168  ;;  %329 = vmatprep.mubr.f32.mxu0 %v1189_v0  ;;  %400 = vmatprep.mubr.f32.mxu1 %v1189_v0  ;;  %v254_v2 = vld [vmem:[%s1359_s23 + $0x48] sm:$0xff]  ;;  %v256_v5 = vld [vmem:[%s1359_s23 + $0x58] sm:$0xff]  ;;  %s891_s30 = sshll.u32 %s1355_s6, 6  ;;  %s906_s15 = sshll.u32 %s1241_s0, 10 }
  0x59   : > { %v908_v4 = vpack.c.bf16 %v254_v2, %v246_v1  ;;  %v253_v7 = vld [vmem:[%s1359_s23 + $0x40] sm:$0xff]  ;;  %v912_v8 = vpack.c.bf16 %v256_v5, %v248_v3  ;;  %v247_v10 = vld [vmem:[%s1359_s23 + $0x10] sm:$0xff]  ;;  %v250_v14 = vld [vmem:[%s1359_s23 + $0x28] sm:$0xff]  ;;  %s1426_s9 = scalar_lea.vmem [#allocation8], %s891_s30  ;;  %s1436_s12 = scalar_lea.vmem [#allocation9], %s891_s30 }
  0x5a   : > { %v910_v9 = vpack.c.bf16 %v253_v7, %v245_v6  ;;  %v255_v11 = vld [vmem:[%s1359_s23 + $0x50] sm:$0xff]  ;;  %v244_v12 = vld [vmem:[#allocation6] sm:$0xff]  ;;  %v258_v15 = vld [vmem:[%s1359_s23 + $0x68] sm:$0xff]  ;;  %s755_s7 = sshll.u32 %s1426_s9, 4  ;;  %s769_s24 = sshll.u32 %s1436_s12, 4  ;;  %s1456_s7 = int_to_ptr.vmem [resolvable:$true] %s755_s7  ;;  %s1467_s24 = int_to_ptr.vmem [resolvable:$true] %s769_s24 }
  0x5b   : > { %909 = vmatprep.subr.bf16.mxu0 %v908_v4  ;;  %v914_v13 = vpack.c.bf16 %v255_v11, %v247_v10  ;;  %v252_v16 = vld [vmem:[%s1359_s23 + $0x38] sm:$0xff]  ;;  %913 = vmatprep.subr.bf16.mxu1 %v912_v8  ;;  %v916_v17 = vpack.c.bf16 %v258_v15, %v250_v14  ;;  %v249_v19 = vld [vmem:[%s1359_s23 + $0x20] sm:$0xff]  ;;  %v251_v23 = vld [vmem:[%s1359_s23 + $0x30] sm:$0xff]  ;;  %s1454_s26 = scalar_lea.hbm %s1535_s3, %s906_s15  ;;  %s1465_s13 = scalar_lea.hbm %s1536_s4, %s906_s15 }
  0x5c   : > { %911 = vmatpush1.bf16.msra.mxu0 %v910_v9  ;;  %v260_v18 = vld [vmem:[%s1359_s23 + $0x78] sm:$0xff]  ;;  %v257_v20 = vld [vmem:[%s1359_s23 + $0x60] sm:$0xff]  ;;  %v259_v24 = vld [vmem:[%s1359_s23 + $0x70] sm:$0xff]  ;;  %s736_s14 = scalar_lea.sflag [#allocation5], %s1355_s6  ;;  %s1080_s16 = scalar_lea.vmem %s1456_s7, 1024 }
  0x5d   : > { %915 = vmatpush1.bf16.msra.mxu1 %v914_v13  ;;  %v920_v21 = vpack.c.bf16 %v260_v18, %v252_v16  ;;  %v918_v22 = vpack.c.bf16 %v257_v20, %v249_v19  ;;  %917 = vmatprep.subr.bf16.mxu0 %v916_v17  ;;  %v922_v25 = vpack.c.bf16 %v259_v24, %v251_v23  ;;  %p1081_p8 = scmp.ne.s32.totalorder %s1456_s7, %s1080_s16  ;;  %p1554_p9 = scmp.ne.s32.totalorder %s1544_s28, 0 }
  0x5e   : > { %s1190_s10 = smov [#allocation8]  }
  0x5f   : > { %893 = vmatmul.mubr.msk.f32.vlgmr.msra.gmra.mrb[0].mxu0 %vm261_vm0, %v244_v12  ;;  %921 = vmatprep.subr.bf16.mxu1 %v920_v21  ;;  %p1082_p10 = pnand %p1081_p8, %p1554_p9  ;;  %s1084_s21 = sshll.u32 %s1190_s10, 4  ;;  %s1085_s21 = int_to_ptr.vmem [resolvable:$false] %s1084_s21 }
  0x60   : > { %894 = vmatmul.mubr.msk.f32.vlgmr.msra.gmra.mrb[0].mxu1 %vm261_vm0, %v244_v12  ;;  %919 = vmatpush1.bf16.msra.mxu0 %v918_v22  ;;  %s1086_s23 = scalar_lea.vmem %s1085_s21, 2048  ;;  %p1087_p1 = scmp.lt.s32.totalorder %s1456_s7, %s1085_s21 }
  0x61   : > { %923 = vmatpush1.bf16.msra.mxu1 %v922_v25  ;;  %471 = vmatprep.mubr.f32.mxu0 %v1189_v0  ;;  %p1083_p5 = pneg %p1082_p10  ;;  %p1088_p2 = scmp.lt.s32.totalorder %s1086_s23, %s1080_s16 }
  0x62   : > { %542 = vmatprep.mubr.f32.mxu1 %v1189_v0 }
  0x63   : > { %895 = vmatmul.mubr.msk.f32.vlgmr.msra.gmra.mrb[2].mxu0 %vm261_vm0, %v244_v12  ;;  %p1089_p4 = por %p1088_p2, %p1087_p1 }
  0x64   : > { %896 = vmatmul.mubr.msk.f32.vlgmr.msra.gmra.mrb[2].mxu1 %vm261_vm0, %v244_v12 }
  0x65   : > { %p1090_p12 = pnand %p1089_p4, %p1083_p5 }
 0x132   : > { %v331_v26 = vpop.f32.mrb[0].mxu0 }
 0x133   : > { %v549_v27 = vrot.slane %v331_v26, 4  ;;  %v402_v28 = vpop.f32.mrb[0].mxu1  ;;  %v333_v29 = vpop.f32.mrb[1].mxu0 }
 0x134   : > { %v561_v30 = vrot.slane %v402_v28, 4  ;;  %v555_v31 = vrot.slane %v333_v29, 4  ;;  %v404_v32 = vpop.f32.mrb[1].mxu1 }
 0x135   : > { %v550_v33 = vmax.f32 %v331_v26, %v549_v27  ;;  %v567_v34 = vrot.slane %v404_v32, 4 }
 0x136   : > { %v562_v35 = vmax.f32 %v402_v28, %v561_v30  ;;  %v556_v36 = vmax.f32 %v333_v29, %v555_v31  ;;  %v473_v37 = vpop.f32.mrb[2].mxu0 }
 0x137   : > { %v551_v38 = vrot.slane %v550_v33, 2  ;;  %v568_v39 = vmax.f32 %v404_v32, %v567_v34  ;;  %v573_v40 = vrot.slane %v473_v37, 4  ;;  %v544_v41 = vpop.f32.mrb[2].mxu1  ;;  %v475_v42 = vpop.f32.mrb[3].mxu0 }
 0x138   : > { %v563_v43 = vrot.slane %v562_v35, 2  ;;  %v557_v44 = vrot.slane %v556_v36, 2  ;;  %v585_v45 = vrot.slane %v544_v41, 4  ;;  %v579_v46 = vrot.slane %v475_v42, 4  ;;  %v546_v47 = vpop.f32.mrb[3].mxu1 }
 0x139   : > { %v552_v48 = vmax.f32 %v550_v33, %v551_v38  ;;  %v569_v49 = vrot.slane %v568_v39, 2  ;;  %v574_v50 = vmax.f32 %v473_v37, %v573_v40  ;;  %v591_v51 = vrot.slane %v546_v47, 4 }
 0x13a   : > { %v564_v52 = vmax.f32 %v562_v35, %v563_v43  ;;  %v558_v53 = vmax.f32 %v556_v36, %v557_v44  ;;  %v586_v54 = vmax.f32 %v544_v41, %v585_v45  ;;  %v580_v55 = vmax.f32 %v475_v42, %v579_v46 }
 0x13b   : > { %v553_v56 = vrot.slane %v552_v48, 1  ;;  %v570_v57 = vmax.f32 %v568_v39, %v569_v49  ;;  %v575_v58 = vrot.slane %v574_v50, 2  ;;  %v592_v59 = vmax.f32 %v546_v47, %v591_v51 }
 0x13c   : > { %v565_v60 = vrot.slane %v564_v52, 1  ;;  %v559_v61 = vrot.slane %v558_v53, 1  ;;  %v587_v62 = vrot.slane %v586_v54, 2  ;;  %v581_v63 = vrot.slane %v580_v55, 2 }
 0x13d   : > { %v554_v0 = vmax.f32 %v552_v48, %v553_v56  ;;  %v571_v1 = vrot.slane %v570_v57, 1  ;;  %v576_v2 = vmax.f32 %v574_v50, %v575_v58  ;;  %v593_v3 = vrot.slane %v592_v59, 2 }
 0x13e   : > { %v566_v4 = vmax.f32 %v564_v52, %v565_v60  ;;  %v560_v5 = vmax.f32 %v558_v53, %v559_v61  ;;  %v588_v6 = vmax.f32 %v586_v54, %v587_v62  ;;  %v582_v7 = vmax.f32 %v580_v55, %v581_v63 }
 0x13f   : > { %v597_v8 = vsub.f32 %v331_v26, %v554_v0  ;;  %v572_v9 = vmax.f32 %v570_v57, %v571_v1  ;;  %v577_v10 = vrot.slane %v576_v2, 1  ;;  %v594_v11 = vmax.f32 %v592_v59, %v593_v3 }
 0x140   : > { %v599_v12 = vsub.f32 %v402_v28, %v566_v4  ;;  %v598_v13 = vsub.f32 %v333_v29, %v560_v5  ;;  %v589_v14 = vrot.slane %v588_v6, 1  ;;  %v583_v15 = vrot.slane %v582_v7, 1 }
 0x141   : > { %v605_v16 = vmul.f32 1.442695, %v597_v8  ;;  %v600_v17 = vsub.f32 %v404_v32, %v572_v9  ;;  %v578_v18 = vmax.f32 %v576_v2, %v577_v10  ;;  %v595_v19 = vrot.slane %v594_v11, 1 }
 0x142   : > { %v609_v20 = vmul.f32 1.442695, %v599_v12  ;;  %v607_v21 = vmul.f32 1.442695, %v598_v13  ;;  %v590_v22 = vmax.f32 %v588_v6, %v589_v14  ;;  %v584_v23 = vmax.f32 %v582_v7, %v583_v15 }
 0x143   : > { %990 = vpow2.f32 %v605_v16  ;;  %v611_v24 = vmul.f32 1.442695, %v600_v17  ;;  %v601_v25 = vsub.f32 %v473_v37, %v578_v18  ;;  %v596_v27 = vmax.f32 %v594_v11, %v595_v19 }
 0x144   : > { %992 = vpow2.f32 %v609_v20  ;;  %v603_v26 = vsub.f32 %v544_v41, %v590_v22  ;;  %v602_v30 = vsub.f32 %v475_v42, %v584_v23 }
 0x145   : > { %994 = vpow2.f32 %v607_v21  ;;  %v613_v28 = vmul.f32 1.442695, %v601_v25  ;;  %v604_v29 = vsub.f32 %v546_v47, %v596_v27 }
 0x146   : > { %996 = vpow2.f32 %v611_v24  ;;  %v617_v31 = vmul.f32 1.442695, %v603_v26  ;;  %v615_v33 = vmul.f32 1.442695, %v602_v30 }
 0x147   : > { %998 = vpow2.f32 %v613_v28  ;;  %v619_v32 = vmul.f32 1.442695, %v604_v29 }
 0x148   : > { %1000 = vpow2.f32 %v617_v31 }
 0x149   : > { %1002 = vpow2.f32 %v615_v33 }
 0x14a   : > { %1004 = vpow2.f32 %v619_v32 }
 0x14d   : > { %v1389_v34 = vpop.eup %990 }
 0x14e   : > { %v1391_v35 = vpop.eup %992  ;;  %v621_v36 = vrot.slane %v1389_v34, 4 }
 0x14f   : > { %v1394_v37 = vpop.eup %994  ;;  %v633_v38 = vrot.slane %v1391_v35, 4 }
 0x150   : > { %v1397_v39 = vpop.eup %996  ;;  %v622_v40 = vadd.f32 %v1389_v34, %v621_v36  ;;  %v627_v41 = vrot.slane %v1394_v37, 4 }
 0x151   : > { %v1401_v42 = vpop.eup %998  ;;  %v634_v43 = vadd.f32 %v1391_v35, %v633_v38  ;;  %v639_v44 = vrot.slane %v1397_v39, 4 }
 0x152   : > { %v1405_v45 = vpop.eup %1000  ;;  %v623_v46 = vrot.slane %v622_v40, 2  ;;  %v628_v47 = vadd.f32 %v1394_v37, %v627_v41  ;;  %v645_v48 = vrot.slane %v1401_v42, 4 }
 0x153   : > { %v1409_v49 = vpop.eup %1002  ;;  %v635_v50 = vrot.slane %v634_v43, 2  ;;  %v640_v51 = vadd.f32 %v1397_v39, %v639_v44  ;;  %v657_v52 = vrot.slane %v1405_v45, 4 }
 0x154   : > { %v1413_v53 = vpop.eup %1004  ;;  %v624_v54 = vadd.f32 %v623_v46, %v622_v40  ;;  %v629_v55 = vrot.slane %v628_v47, 2  ;;  %v646_v56 = vadd.f32 %v1401_v42, %v645_v48  ;;  %v651_v57 = vrot.slane %v1409_v49, 4 }
 0x155   : > { %v636_v58 = vadd.f32 %v635_v50, %v634_v43  ;;  %v641_v59 = vrot.slane %v640_v51, 2  ;;  %v658_v60 = vadd.f32 %v1405_v45, %v657_v52  ;;  %v663_v61 = vrot.slane %v1413_v53, 4 }
 0x156   : > { %v625_v62 = vrot.slane %v624_v54, 1  ;;  %v630_v63 = vadd.f32 %v629_v55, %v628_v47  ;;  %v647_v0 = vrot.slane %v646_v56, 2  ;;  %v652_v1 = vadd.f32 %v1409_v49, %v651_v57 }
 0x157   : > { %v637_v2 = vrot.slane %v636_v58, 1  ;;  %v642_v3 = vadd.f32 %v641_v59, %v640_v51  ;;  %v659_v4 = vrot.slane %v658_v60, 2  ;;  %v664_v5 = vadd.f32 %v1413_v53, %v663_v61 }
 0x158   : > { %v626_v6 = vadd.f32 %v625_v62, %v624_v54  ;;  %v631_v7 = vrot.slane %v630_v63, 1  ;;  %v648_v8 = vadd.f32 %v647_v0, %v646_v56  ;;  %v653_v9 = vrot.slane %v652_v1, 2 }
 0x159   : > { %v638_v10 = vadd.f32 %v637_v2, %v636_v58  ;;  %v643_v11 = vrot.slane %v642_v3, 1  ;;  %v660_v12 = vadd.f32 %v659_v4, %v658_v60  ;;  %v665_v13 = vrot.slane %v664_v5, 2 }
 0x15a   : > { %1006 = vrcp.f32 %v626_v6  ;;  %v632_v14 = vadd.f32 %v631_v7, %v630_v63  ;;  %v649_v15 = vrot.slane %v648_v8, 1  ;;  %v654_v16 = vadd.f32 %v653_v9, %v652_v1 }
 0x15b   : > { %1008 = vrcp.f32 %v638_v10  ;;  %v644_v17 = vadd.f32 %v643_v11, %v642_v3  ;;  %v661_v18 = vrot.slane %v660_v12, 1  ;;  %v666_v19 = vadd.f32 %v665_v13, %v664_v5 }
 0x15c   : > { %1010 = vrcp.f32 %v632_v14  ;;  %v650_v20 = vadd.f32 %v649_v15, %v648_v8  ;;  %v655_v21 = vrot.slane %v654_v16, 1  ;;  %v718_v48 = vstv %s717_s27 }
 0x15d   : > { %1012 = vrcp.f32 %v644_v17  ;;  %v662_v22 = vadd.f32 %v661_v18, %v660_v12  ;;  %v667_v23 = vrot.slane %v666_v19, 1 }
 0x15e   : > { %1014 = vrcp.f32 %v650_v20  ;;  %v656_v24 = vadd.f32 %v655_v21, %v654_v16 }
 0x15f   : > { %1016 = vrcp.f32 %v662_v22  ;;  %v668_v25 = vadd.f32 %v667_v23, %v666_v19 }
 0x160   : > { %1018 = vrcp.f32 %v656_v24 }
 0x161   : > { %1020 = vrcp.f32 %v668_v25 }
 0x164   : > { %v1007_v27 = vpop.eup %1006 }
 0x165   : > { %v1009_v26 = vpop.eup %1008  ;;  %v677_v30 = vmul.f32 %v1007_v27, %v626_v6 }
 0x166   : > { %v1011_v28 = vpop.eup %1010  ;;  %v679_v29 = vmul.f32 %v1009_v26, %v638_v10 }
 0x167   : > { %v1013_v31 = vpop.eup %1012  ;;  %v685_v33 = vsub.f32 2.0, %v677_v30  ;;  %v678_v32 = vmul.f32 %v1011_v28, %v632_v14 }
 0x168   : > { %v1015_v36 = vpop.eup %1014  ;;  %v687_v38 = vsub.f32 2.0, %v679_v29  ;;  %v680_v40 = vmul.f32 %v1013_v31, %v644_v17 }
 0x169   : > { %v1017_v41 = vpop.eup %1016  ;;  %v693_v43 = vmul.f32 %v1007_v27, %v685_v33  ;;  %v686_v44 = vsub.f32 2.0, %v678_v32  ;;  %v681_v46 = vmul.f32 %v1015_v36, %v650_v20 }
 0x16a   : > { %v1019_v47 = vpop.eup %1018  ;;  %v695_v50 = vmul.f32 %v1009_v26, %v687_v38  ;;  %v688_v51 = vsub.f32 2.0, %v680_v40  ;;  %v683_v52 = vmul.f32 %v1017_v41, %v662_v22 }
 0x16b   : > { %v1021_v54 = vpop.eup %1020  ;;  %v701_v55 = vmul.f32 %v1389_v34, %v693_v43  ;;  %v694_v56 = vmul.f32 %v1011_v28, %v686_v44  ;;  %v689_v57 = vsub.f32 2.0, %v681_v46  ;;  %v682_v58 = vmul.f32 %v1019_v47, %v656_v24 }
 0x16c   : > { %v703_v59 = vmul.f32 %v1391_v35, %v695_v50  ;;  %v696_v60 = vmul.f32 %v1013_v31, %v688_v51  ;;  %v691_v61 = vsub.f32 2.0, %v683_v52  ;;  %v684_v62 = vmul.f32 %v1021_v54, %v668_v25 }
 0x16d   : > { %709 = vst [vmem:[%s1426_s9] sm:$0xff] %v701_v55  ;;  %v719_v63 = vmul.f32 %v718_v48, %v701_v55  ;;  %v702_v34 = vmul.f32 %v1394_v37, %v694_v56  ;;  %v697_v0 = vmul.f32 %v1015_v36, %v689_v57  ;;  %v690_v1 = vsub.f32 2.0, %v682_v58 }
 0x16e   : > { %711 = vst [vmem:[%s1426_s9 + $0x10] sm:$0xff] %v703_v59  ;;  %v721_v35 = vmul.f32 %v718_v48, %v703_v59  ;;  %v704_v2 = vmul.f32 %v1397_v39, %v696_v60  ;;  %v699_v3 = vmul.f32 %v1017_v41, %v691_v61  ;;  %v692_v4 = vsub.f32 2.0, %v684_v62 }
 0x16f   : > { %710 = vst [vmem:[%s1426_s9 + $0x8] sm:$0xff] %v702_v34  ;;  %v720_v5 = vmul.f32 %v718_v48, %v702_v34  ;;  %v705_v6 = vmul.f32 %v1401_v42, %v697_v0  ;;  %v698_v7 = vmul.f32 %v1019_v47, %v690_v1  ;;  %727 = vst [vmem:[%s1436_s12] sm:$0xff] %v719_v63 }
 0x170   : > { %712 = vst [vmem:[%s1426_s9 + $0x18] sm:$0xff] %v704_v2  ;;  %v722_v37 = vmul.f32 %v718_v48, %v704_v2  ;;  %v707_v39 = vmul.f32 %v1405_v45, %v699_v3  ;;  %729 = vst [vmem:[%s1436_s12 + $0x10] sm:$0xff] %v721_v35  ;;  %v700_v42 = vmul.f32 %v1021_v54, %v692_v4 }
 0x171   : > { %713 = vst [vmem:[%s1426_s9 + $0x20] sm:$0xff] %v705_v6  ;;  %v723_v8 = vmul.f32 %v718_v48, %v705_v6  ;;  %v706_v9 = vmul.f32 %v1409_v49, %v698_v7  ;;  %728 = vst [vmem:[%s1436_s12 + $0x8] sm:$0xff] %v720_v5 }
 0x172   : > { %715 = vst [vmem:[%s1426_s9 + $0x30] sm:$0xff] %v707_v39  ;;  %v725_v10 = vmul.f32 %v718_v48, %v707_v39  ;;  %730 = vst [vmem:[%s1436_s12 + $0x18] sm:$0xff] %v722_v37  ;;  %v708_v11 = vmul.f32 %v1413_v53, %v700_v42 }
 0x173   : > { %714 = vst [vmem:[%s1426_s9 + $0x28] sm:$0xff] %v706_v9  ;;  %v724_v45 = vmul.f32 %v718_v48, %v706_v9  ;;  %731 = vst [vmem:[%s1436_s12 + $0x20] sm:$0xff] %v723_v8 }
 0x174   : > { %733 = vst [vmem:[%s1436_s12 + $0x30] sm:$0xff] %v725_v10  ;;  %716 = vst [vmem:[%s1426_s9 + $0x38] sm:$0xff] %v708_v11  ;;  %v726_v49 = vmul.f32 %v718_v48, %v708_v11 }
 0x175   : > { %732 = vst [vmem:[%s1436_s12 + $0x28] sm:$0xff] %v724_v45 }
 0x176   : > { %1093 = shalt.err (!%p1090_p12)
}
 0x177   : > { %s1094_s27 = scalar_lea.hbm %s1454_s26, 1024  ;;  %s1098_s15 = scalar_lea.hbm %s1535_s3, 3072 }
 0x178   : > { %p1095_p0 = scmp.ne.s32.totalorder %s1454_s26, %s1094_s27  ;;  %p1099_p13 = scmp.lt.u32.totalorder %s1454_s26, %s1535_s3 }
 0x179   : > { %p1100_p6 = scmp.lt.u32.totalorder %s1098_s15, %s1094_s27  ;;  %p1102_p8 = scmp.lt.u32.totalorder %s1094_s27, %s1454_s26 }
 0x17a   : > { %p1096_p3 = pnand %p1095_p0, %p1554_p9 }
 0x17b   : > { %p1101_p7 = por %p1100_p6, %p1099_p13 }
 0x17c   : > { %p1097_p11 = pneg %p1096_p3 }
 0x17d   : > { %p1103_p10 = por %p1102_p8, %p1101_p7 }
 0x17f   : > { %p1104_p5 = pnand %p1103_p10, %p1097_p11 }
 0x181   : > { %1107 = shalt.err (!%p1104_p5)
}
 0x182   : > { %930 = dma.vmem_to_hbm [thread:$0]  (%p1554_p9), %s1456_s7, 1024, %s1454_s26, %s736_s14   ;;  %734 = vst [vmem:[%s1436_s12 + $0x38] sm:$0xff] %v726_v49 }
 0x183   : > { %s741_s5 = scalar_lea.sflag [#allocation10], %s1355_s6  ;;  %s1108_s11 = scalar_lea.vmem %s1467_s24, 1024 }
 0x184   : > { %p1109_p1 = scmp.ne.s32.totalorder %s1467_s24, %s1108_s11  ;;  %s1191_s16 = smov [#allocation9]  }
 0x185   : > { %s1112_s10 = sshll.u32 %s1191_s16, 4  ;;  %s1113_s10 = int_to_ptr.vmem [resolvable:$false] %s1112_s10 }
 0x186   : > { %p1110_p2 = pnand %p1109_p1, %p1554_p9  ;;  %s1114_s21 = scalar_lea.vmem %s1113_s10, 2048 }
 0x187   : > { %p1115_p12 = scmp.lt.s32.totalorder %s1467_s24, %s1113_s10  ;;  %p1116_p0 = scmp.lt.s32.totalorder %s1114_s21, %s1108_s11 }
 0x188   : > { %p1111_p4 = pneg %p1110_p2 }
 0x189   : > { %p1117_p3 = por %p1116_p0, %p1115_p12 }
 0x18b   : > { %p1118_p11 = pnand %p1117_p3, %p1111_p4 }
 0x18d   : > { %1121 = shalt.err (!%p1118_p11)
}
 0x18e   : > { %s1122_s6 = scalar_lea.hbm %s1465_s13, 1024  ;;  %s1126_s26 = scalar_lea.hbm %s1536_s4, 3072 }
 0x18f   : > { %p1123_p13 = scmp.ne.s32.totalorder %s1465_s13, %s1122_s6  ;;  %p1127_p8 = scmp.lt.u32.totalorder %s1465_s13, %s1536_s4 }
 0x190   : > { %p1128_p10 = scmp.lt.u32.totalorder %s1126_s26, %s1122_s6  ;;  %p1130_p1 = scmp.lt.u32.totalorder %s1122_s6, %s1465_s13 }
 0x191   : > { %p1124_p6 = pnand %p1123_p13, %p1554_p9 }
 0x192   : > { %p1129_p5 = por %p1128_p10, %p1127_p8 }
 0x193   : > { %p1125_p7 = pneg %p1124_p6 }
 0x194   : > { %p1131_p2 = por %p1130_p1, %p1129_p5 }
 0x196   : > { %p1132_p4 = pnand %p1131_p2, %p1125_p7 }
 0x198   : > { %1135 = shalt.err (!%p1132_p4)
}
 0x199   : > { %931 = dma.vmem_to_hbm [thread:$0]  (%p1554_p9), %s1467_s24, 1024, %s1465_s13, %s741_s5  }
 0x19a PF: > { %p952_p12 = scmp.ge.s32.totalorder %s1182_s20, 2  ;;  %s781_s27 = sand.u32 1, %s1170_s17  }
 0x19b   : > { %p1555_p0 = scmp.ne.s32.totalorder %s1545_s29, 0  ;;  %s782_s30 = scalar_lea.sflag [#allocation5], %s781_s27 }
 0x19d   : > { %p943_p3 = pnand %p952_p12, %p1555_p0 }
 0x19f   : > { %1161 = dma.done.wait (!%p943_p3), %s782_s30, 1024  }
 0x1a0   : > { %1163 = vsyncadd (!%p943_p3), %s782_s30, 4294966272  ;;  %s791_s9 = scalar_lea.sflag [#allocation10], %s781_s27 }
 0x1a1   : > { %1165 = dma.done.wait (!%p943_p3), %s791_s9, 1024  }
 0x1a2   : > { %1167 = vsyncadd (!%p943_p3), %s791_s9, 4294966272  ;;  %p23_p9 = scmp.ge.s32.totalorder %s1245_s22, 5   ;;  %s1556_s17 = smov %s1174_s18 }
 0x1a3   : > { %s1557_s18 = smov %s1178_s19  ;;  %s1558_s19 = smov %s1257_s25 }
 0x1a4   : > { %s1559_s20 = smov %s1245_s22  ;;  %25 = sbr.rel (!%p23_p9) target bundleno = 10 (0xa), region = 98 }
 0x1ab   :  { %796 = vsyncpa [#allocation4], 1 }
 0x1ac   :  { %798 = vsyncpa [#allocation4 + $0x1], 1 }
 0x1ad   :  { %799 = vsyncpa [#allocation7], 1 }
 0x1ae   :  { %800 = vsyncpa [#allocation5], 1 }
 0x1af   :  { %802 = vsyncpa [#allocation5 + $0x1], 1 }
 0x1b0   :  { %803 = vsyncpa [#allocation10], 1 }
 0x1b1   :  { %805 = vsyncpa [#allocation10 + $0x1], 1 }

</bundles_post_ra>
